<compile_context>
chip_gen: v7x
topology: tpu7x:2x2x1
jax: 0.10.0
libtpu: 0.0.40
codegen_flags: <defaults>
</compile_context>

<pallas_src>
import math
from functools import partial

import jax
import jax.numpy as jnp
from jax.experimental import pallas as pl
from jax.experimental.pallas import tpu as pltpu


# --------------------------------------------------------------------------- #
# Kernel
# --------------------------------------------------------------------------- #
def attention_head_kernel(q_ref, k_ref, v_ref, w_ref, b_ref, o_ref, *, mxu_dtype):
    # q_ref/k_ref/v_ref: (bn, L, d_model)
    # w_ref: (3, d_model, d_feature)  -- [Wq*scale, Wk, Wv] stacked densely
    # b_ref: (3, 1, d_feature)        -- [bq*scale, bk, bv]
    # o_ref: (bn, L, d_feature)
    bn, L, d_model = q_ref.shape
    d_feature = o_ref.shape[-1]
    lowp = mxu_dtype != jnp.float32

    def proj(x_ref, p):
        # Fold the batch into the matmul rows: taller M tile for the MXU.
        x = x_ref[...].reshape(bn * L, d_model)
        w = w_ref[p]
        if lowp:
            x = x.astype(mxu_dtype)
            w = w.astype(mxu_dtype)
        y = jnp.dot(x, w, preferred_element_type=jnp.float32) + b_ref[p]
        return y.reshape(bn, L, d_feature)

    q = proj(q_ref, 0)   # 1/sqrt(d_k) already folded into Wq / bq
    k = proj(k_ref, 1)
    v = proj(v_ref, 2)

    # QK^T: einsum contracts on the trailing dims, so the MXU consumes K
    # transposed directly (no explicit .T / XLU transpose pass).
    qc = q.astype(mxu_dtype) if lowp else q
    kc = k.astype(mxu_dtype) if lowp else k
    scores = jnp.einsum("bld,bmd->blm", qc, kc,
                        preferred_element_type=jnp.float32)        # (bn, L, L)

    # Numerically-stable softmax (identical to the torch exp/row-sum formula).
    m = jnp.max(scores, axis=-1, keepdims=True)
    p = jnp.exp(scores - m)
    s = jnp.sum(p, axis=-1, keepdims=True)
    r = pl.reciprocal(s, approx=True)        # EUP slot, ~free next to the exp
    r = r * (2.0 - s * r)                    # one Newton step -> f32 accuracy
    attn = p * r
    # TODO(synk): dropout on `attn` is identity (eval mode only).

    ac = attn.astype(mxu_dtype) if lowp else attn
    vc = v.astype(mxu_dtype) if lowp else v
    out = jnp.einsum("blm,bmd->bld", ac, vc,
                     preferred_element_type=jnp.float32)           # (bn, L, d_f)
    o_ref[...] = out.astype(o_ref.dtype)


# --------------------------------------------------------------------------- #
# Wrapper
# --------------------------------------------------------------------------- #
def _device_kind():
    try:
        return jax.devices()[0].device_kind.lower()
    except Exception:
        return ""


def default_mxu_dtype():
    """bf16 MXU operands (f32 accumulate) on v6e / v7x; f32 elsewhere."""
    kind = _device_kind()
    if "v6" in kind or "v7" in kind or "7x" in kind:
        return jnp.bfloat16
    return jnp.float32


def _num_tensorcores():
    kind = _device_kind()
    return 2 if ("v7" in kind or "7x" in kind) else 1


def _pick_batch_block(N, per_batch_bytes, fixed_bytes, budget_bytes, num_tc):
    """Largest divisor of N that fits the VMEM budget; on multi-TC chips keep
    at least `num_tc` blocks so both cores get work."""
    target = N if num_tc <= 1 else max(1, N // num_tc)
    bn = target
    while bn > 1 and (N % bn != 0 or fixed_bytes + bn * per_batch_bytes > budget_bytes):
        bn -= 1
    return max(bn, 1)


def attention_head(queries, keys, values, wq, bq, wk, bk, wv, bv, *, mxu_dtype=None):
    """queries/keys/values: (N, L, d_model); w*: (d_model, d_feature); b*: (1, d_feature)."""
    N, L, d_model = queries.shape
    d_feature = wq.shape[1]
    if mxu_dtype is None:
        mxu_dtype = default_mxu_dtype()

    # One-time parameter packing (tiny, dense -- no zero padding).  The
    # 1/sqrt(d_k) attention scale is folded into the query projection.
    scale = 1.0 / math.sqrt(d_feature)
    w_stack = jnp.stack([wq * scale, wk, wv], axis=0)     # (3, d_model, d_feature)
    b_stack = jnp.stack([bq * scale, bk, bv], axis=0)     # (3, 1, d_feature)

    # ---- batch tiling: driven by VMEM footprint + TensorCore count ----------
    f32b = 4
    per_batch_bytes = f32b * (
        2 * 3 * L * d_model        # q/k/v input blocks, double-buffered
        + 2 * L * d_feature        # output block, double-buffered
        + 3 * L * d_feature        # projected q/k/v
        + 2 * L * L                # scores + exp(scores)
        + L * d_feature            # attn @ V result
    )
    fixed_bytes = 2 * f32b * (3 * d_model * d_feature + 3 * d_feature)  # weights+bias
    VMEM_BUDGET = 24 * (1 << 20)   # conservative: fits v7x's 32 MiB scoped default

    num_tc = _num_tensorcores()
    bn = _pick_batch_block(N, per_batch_bytes, fixed_bytes, VMEM_BUDGET, num_tc)
    grid_n = N // bn

    footprint = fixed_bytes + bn * per_batch_bytes
    vmem_limit_bytes = int(max(16 << 20, min(48 << 20, 2 * footprint),
                               footprint + (4 << 20)))

    qkv_spec = pl.BlockSpec((bn, L, d_model), lambda i: (i, 0, 0))
    w_spec = pl.BlockSpec((3, d_model, d_feature), lambda i: (0, 0, 0))
    b_spec = pl.BlockSpec((3, 1, d_feature), lambda i: (0, 0, 0))
    o_spec = pl.BlockSpec((bn, L, d_feature), lambda i: (i, 0, 0))

    # Cost estimate for the *dense* work actually performed.
    proj_flops = 3 * 2 * N * L * d_model * d_feature
    attn_flops = 2 * 2 * N * L * L * d_feature
    bytes_accessed = f32b * (3 * N * L * d_model          # q/k/v in
                             + 3 * d_model * d_feature    # weights
                             + 3 * d_feature              # biases
                             + N * L * d_feature)         # out

    return pl.pallas_call(
        partial(attention_head_kernel, mxu_dtype=mxu_dtype),
        out_shape=jax.ShapeDtypeStruct((N, L, d_feature), queries.dtype),
        grid_spec=pltpu.PrefetchScalarGridSpec(
            num_scalar_prefetch=0,
            grid=(grid_n,),
            in_specs=[qkv_spec, qkv_spec, qkv_spec, w_spec, b_spec],
            out_specs=o_spec,
        ),
        compiler_params=pltpu.CompilerParams(
            dimension_semantics=("parallel",),
            vmem_limit_bytes=vmem_limit_bytes),
        cost_estimate=pl.CostEstimate(
            flops=proj_flops + attn_flops,
            transcendentals=N * L * L + N * L,
            bytes_accessed=bytes_accessed),
    )(queries, keys, values, w_stack, b_stack)


# --------------------------------------------------------------------------- #
# Reference + test
# --------------------------------------------------------------------------- #
def reference(queries, keys, values, wq, bq, wk, bk, wv, bv):
    q = queries @ wq + bq
    k = keys @ wk + bk
    v = values @ wv + bv
    d_k = q.shape[-1]
    attn = jnp.einsum("nld,nmd->nlm", q, k) / math.sqrt(d_k)
    attn = jnp.exp(attn)
    attn = attn / attn.sum(-1, keepdims=True)
    return jnp.einsum("nlm,nmd->nld", attn, v)


if __name__ == "__main__":
    # Small shapes consistent with the module: batch=2, seq=8, d_model=32, d_feature=16
    N, L, d_model, d_feature = 2, 8, 32, 16

    key = jax.random.PRNGKey(0)
    kq, kk, kv, kwq, kwk, kwv, kbq, kbk, kbv = jax.random.split(key, 9)

    queries = jax.random.normal(kq, (N, L, d_model), dtype=jnp.float32)
    keys = jax.random.normal(kk, (N, L, d_model), dtype=jnp.float32)
    values = jax.random.normal(kv, (N, L, d_model), dtype=jnp.float32)

    # Deterministic nn.Linear-like uniform init, stored as (d_model, d_feature).
    bound = 1.0 / math.sqrt(d_model)
    wq = jax.random.uniform(kwq, (d_model, d_feature), minval=-bound, maxval=bound, dtype=jnp.float32)
    wk = jax.random.uniform(kwk, (d_model, d_feature), minval=-bound, maxval=bound, dtype=jnp.float32)
    wv = jax.random.uniform(kwv, (d_model, d_feature), minval=-bound, maxval=bound, dtype=jnp.float32)
    bq = jax.random.uniform(kbq, (1, d_feature), minval=-bound, maxval=bound, dtype=jnp.float32)
    bk = jax.random.uniform(kbk, (1, d_feature), minval=-bound, maxval=bound, dtype=jnp.float32)
    bv = jax.random.uniform(kbv, (1, d_feature), minval=-bound, maxval=bound, dtype=jnp.float32)

    mxu_dtype = default_mxu_dtype()
    out = attention_head(queries, keys, values, wq, bq, wk, bk, wv, bv,
                         mxu_dtype=mxu_dtype)
    out = jax.block_until_ready(out)

    ref = reference(queries, keys, values, wq, bq, wk, bk, wv, bv)
    assert out.shape == (N, L, d_feature), out.shape
    # Tolerance depends on the MXU operand dtype: f32 operands are ~1e-6 off the
    # XLA reference; bf16 operands (f32 accumulate) land in the ~1e-2 range.
    tol = 5e-2 if mxu_dtype == jnp.bfloat16 else 2e-3
    assert jnp.allclose(out, ref, atol=tol, rtol=tol), float(jnp.max(jnp.abs(out - ref)))

    print("KERNEL_OK")
</pallas_src>

<mosaic_0001>
module attributes {stable_mosaic.version = 11 : i64} {
  func.func @attention_head_kernel(%arg0: i32, %arg1: memref<2x8x32xf32, #tpu.memory_space<vmem>>, %arg2: memref<2x8x32xf32, #tpu.memory_space<vmem>>, %arg3: memref<2x8x32xf32, #tpu.memory_space<vmem>>, %arg4: memref<3x32x16xf32, #tpu.memory_space<vmem>>, %arg5: memref<3x1x16xf32, #tpu.memory_space<vmem>>, %arg6: memref<2x8x16xf32, #tpu.memory_space<vmem>>) attributes {dimension_semantics = [#tpu.dimension_semantics<parallel>], iteration_bounds = array<i64: 1>, scalar_prefetch = 0 : i64, scratch_operands = 0 : i64, tpu.core_type = #tpu.core_type<tc>, window_params = [{transform_indices = @transform_0, window_bounds = array<i64: 2, 8, 32>}, {transform_indices = @transform_1, window_bounds = array<i64: 2, 8, 32>}, {transform_indices = @transform_2, window_bounds = array<i64: 2, 8, 32>}, {pipeline_mode = #tpu.pipeline_mode<synchronous>, transform_indices = @transform_3, window_bounds = array<i64: 3, 32, 16>}, {pipeline_mode = #tpu.pipeline_mode<synchronous>, transform_indices = @transform_4, window_bounds = array<i64: 3, 1, 16>}, {transform_indices = @transform_5, window_bounds = array<i64: 2, 8, 16>}]} {
    %c0 = arith.constant 0 : index
    %c0_0 = arith.constant 0 : index
    %c0_1 = arith.constant 0 : index
    %0 = vector.load %arg1[%c0, %c0_0, %c0_1] : memref<2x8x32xf32, #tpu.memory_space<vmem>>, vector<2x8x32xf32>
    %1 = vector.shape_cast %0 : vector<2x8x32xf32> to vector<16x32xf32>
    %c0_2 = arith.constant 0 : index
    %c0_3 = arith.constant 0 : index
    %c0_4 = arith.constant 0 : index
    %2 = vector.load %arg4[%c0_2, %c0_3, %c0_4] : memref<3x32x16xf32, #tpu.memory_space<vmem>>, vector<1x32x16xf32>
    %3 = vector.shape_cast %2 : vector<1x32x16xf32> to vector<32x16xf32>
    %cst = arith.constant dense<0.000000e+00> : vector<16x16xf32>
    %4 = tpu.matmul %1, %3, %cst {dimension_numbers = #tpu.dot_dimension_numbers<[1], [0], [0], [1], [0, 0, 1, 1], [], []>} : vector<16x32xf32>, vector<32x16xf32>, vector<16x16xf32> -> vector<16x16xf32>
    %c0_5 = arith.constant 0 : index
    %c0_6 = arith.constant 0 : index
    %c0_7 = arith.constant 0 : index
    %5 = vector.load %arg5[%c0_5, %c0_6, %c0_7] : memref<3x1x16xf32, #tpu.memory_space<vmem>>, vector<1x1x16xf32>
    %6 = vector.shape_cast %5 : vector<1x1x16xf32> to vector<1x16xf32>
    %7 = vector.broadcast %6 : vector<1x16xf32> to vector<16x16xf32>
    %8 = arith.addf %4, %7 : vector<16x16xf32>
    %9 = vector.shape_cast %8 : vector<16x16xf32> to vector<2x8x16xf32>
    %c0_8 = arith.constant 0 : index
    %c0_9 = arith.constant 0 : index
    %c0_10 = arith.constant 0 : index
    %10 = vector.load %arg2[%c0_8, %c0_9, %c0_10] : memref<2x8x32xf32, #tpu.memory_space<vmem>>, vector<2x8x32xf32>
    %11 = vector.shape_cast %10 : vector<2x8x32xf32> to vector<16x32xf32>
    %c1 = arith.constant 1 : index
    %c0_11 = arith.constant 0 : index
    %c0_12 = arith.constant 0 : index
    %12 = vector.load %arg4[%c1, %c0_11, %c0_12] : memref<3x32x16xf32, #tpu.memory_space<vmem>>, vector<1x32x16xf32>
    %13 = vector.shape_cast %12 : vector<1x32x16xf32> to vector<32x16xf32>
    %cst_13 = arith.constant dense<0.000000e+00> : vector<16x16xf32>
    %14 = tpu.matmul %11, %13, %cst_13 {dimension_numbers = #tpu.dot_dimension_numbers<[1], [0], [0], [1], [0, 0, 1, 1], [], []>} : vector<16x32xf32>, vector<32x16xf32>, vector<16x16xf32> -> vector<16x16xf32>
    %c1_14 = arith.constant 1 : index
    %c0_15 = arith.constant 0 : index
    %c0_16 = arith.constant 0 : index
    %15 = vector.load %arg5[%c1_14, %c0_15, %c0_16] : memref<3x1x16xf32, #tpu.memory_space<vmem>>, vector<1x1x16xf32>
    %16 = vector.shape_cast %15 : vector<1x1x16xf32> to vector<1x16xf32>
    %17 = vector.broadcast %16 : vector<1x16xf32> to vector<16x16xf32>
    %18 = arith.addf %14, %17 : vector<16x16xf32>
    %19 = vector.shape_cast %18 : vector<16x16xf32> to vector<2x8x16xf32>
    %c0_17 = arith.constant 0 : index
    %c0_18 = arith.constant 0 : index
    %c0_19 = arith.constant 0 : index
    %20 = vector.load %arg3[%c0_17, %c0_18, %c0_19] : memref<2x8x32xf32, #tpu.memory_space<vmem>>, vector<2x8x32xf32>
    %21 = vector.shape_cast %20 : vector<2x8x32xf32> to vector<16x32xf32>
    %c2 = arith.constant 2 : index
    %c0_20 = arith.constant 0 : index
    %c0_21 = arith.constant 0 : index
    %22 = vector.load %arg4[%c2, %c0_20, %c0_21] : memref<3x32x16xf32, #tpu.memory_space<vmem>>, vector<1x32x16xf32>
    %23 = vector.shape_cast %22 : vector<1x32x16xf32> to vector<32x16xf32>
    %cst_22 = arith.constant dense<0.000000e+00> : vector<16x16xf32>
    %24 = tpu.matmul %21, %23, %cst_22 {dimension_numbers = #tpu.dot_dimension_numbers<[1], [0], [0], [1], [0, 0, 1, 1], [], []>} : vector<16x32xf32>, vector<32x16xf32>, vector<16x16xf32> -> vector<16x16xf32>
    %c2_23 = arith.constant 2 : index
    %c0_24 = arith.constant 0 : index
    %c0_25 = arith.constant 0 : index
    %25 = vector.load %arg5[%c2_23, %c0_24, %c0_25] : memref<3x1x16xf32, #tpu.memory_space<vmem>>, vector<1x1x16xf32>
    %26 = vector.shape_cast %25 : vector<1x1x16xf32> to vector<1x16xf32>
    %27 = vector.broadcast %26 : vector<1x16xf32> to vector<16x16xf32>
    %28 = arith.addf %24, %27 : vector<16x16xf32>
    %29 = vector.shape_cast %28 : vector<16x16xf32> to vector<2x8x16xf32>
    "tpu.trace_start"() <{level = 10 : i32, message = "bld,bmd->blm"}> : () -> ()
    %cst_26 = arith.constant dense<0.000000e+00> : vector<2x8x8xf32>
    %30 = tpu.matmul %9, %19, %cst_26 {dimension_numbers = #tpu.dot_dimension_numbers<[2], [2], [1], [1], [0, 0, 0, 1, 1, 1], [0], [0]>} : vector<2x8x16xf32>, vector<2x8x16xf32>, vector<2x8x8xf32> -> vector<2x8x8xf32>
    "tpu.trace_stop"() : () -> ()
    %cst_27 = arith.constant dense<0xFF800000> : vector<2x8xf32>
    %31 = vector.multi_reduction <maximumf>, %30, %cst_27 [2] : vector<2x8x8xf32> to vector<2x8xf32>
    %32 = vector.shape_cast %31 : vector<2x8xf32> to vector<2x8x1xf32>
    %33 = vector.broadcast %32 : vector<2x8x1xf32> to vector<2x8x8xf32>
    %34 = arith.subf %30, %33 : vector<2x8x8xf32>
    %35 = math.exp %34 : vector<2x8x8xf32>
    %cst_28 = arith.constant dense<0.000000e+00> : vector<2x8xf32>
    %36 = vector.multi_reduction <add>, %35, %cst_28 [2] : vector<2x8x8xf32> to vector<2x8xf32>
    %37 = vector.shape_cast %36 : vector<2x8xf32> to vector<2x8x1xf32>
    %38 = tpu.reciprocal %37 {approx = true} : vector<2x8x1xf32> -> vector<2x8x1xf32>
    %39 = arith.mulf %37, %38 : vector<2x8x1xf32>
    %cst_29 = arith.constant 2.000000e+00 : f32
    %40 = vector.broadcast %cst_29 : f32 to vector<2x8x1xf32>
    %41 = arith.subf %40, %39 : vector<2x8x1xf32>
    %42 = arith.mulf %38, %41 : vector<2x8x1xf32>
    %43 = vector.broadcast %42 : vector<2x8x1xf32> to vector<2x8x8xf32>
    %44 = arith.mulf %35, %43 : vector<2x8x8xf32>
    "tpu.trace_start"() <{level = 10 : i32, message = "blm,bmd->bld"}> : () -> ()
    %cst_30 = arith.constant dense<0.000000e+00> : vector<2x8x16xf32>
    %45 = tpu.matmul %44, %29, %cst_30 {dimension_numbers = #tpu.dot_dimension_numbers<[2], [1], [1], [2], [0, 0, 0, 1, 1, 2], [0], [0]>} : vector<2x8x8xf32>, vector<2x8x16xf32>, vector<2x8x16xf32> -> vector<2x8x16xf32>
    "tpu.trace_stop"() : () -> ()
    %c0_31 = arith.constant 0 : index
    %c0_32 = arith.constant 0 : index
    %c0_33 = arith.constant 0 : index
    %46 = vector.load %arg6[%c0_31, %c0_32, %c0_33] : memref<2x8x16xf32, #tpu.memory_space<vmem>>, vector<2x8x16xf32>
    tpu.vector_store %arg6[%c0_31, %c0_32, %c0_33], %45 {strides = array<i32>} : memref<2x8x16xf32, #tpu.memory_space<vmem>>, vector<2x8x16xf32>,
    return
  }
  func.func @transform_0(%arg0: i32) -> (i32, i32, i32) {
    %c0_i32 = arith.constant 0 : i32
    %c0_i32_0 = arith.constant 0 : i32
    %c0_i32_1 = arith.constant 0 : i32
    return %arg0, %c0_i32, %c0_i32_0 : i32, i32, i32
  }
  func.func @transform_1(%arg0: i32) -> (i32, i32, i32) {
    %c0_i32 = arith.constant 0 : i32
    %c0_i32_0 = arith.constant 0 : i32
    %c0_i32_1 = arith.constant 0 : i32
    return %arg0, %c0_i32, %c0_i32_0 : i32, i32, i32
  }
  func.func @transform_2(%arg0: i32) -> (i32, i32, i32) {
    %c0_i32 = arith.constant 0 : i32
    %c0_i32_0 = arith.constant 0 : i32
    %c0_i32_1 = arith.constant 0 : i32
    return %arg0, %c0_i32, %c0_i32_0 : i32, i32, i32
  }
  func.func @transform_3(%arg0: i32) -> (i32, i32, i32) {
    %c0_i32 = arith.constant 0 : i32
    %c0_i32_0 = arith.constant 0 : i32
    %c0_i32_1 = arith.constant 0 : i32
    %c0_i32_2 = arith.constant 0 : i32
    return %c0_i32, %c0_i32_0, %c0_i32_1 : i32, i32, i32
  }
  func.func @transform_4(%arg0: i32) -> (i32, i32, i32) {
    %c0_i32 = arith.constant 0 : i32
    %c0_i32_0 = arith.constant 0 : i32
    %c0_i32_1 = arith.constant 0 : i32
    %c0_i32_2 = arith.constant 0 : i32
    return %c0_i32, %c0_i32_0, %c0_i32_1 : i32, i32, i32
  }
  func.func @transform_5(%arg0: i32) -> (i32, i32, i32) {
    %c0_i32 = arith.constant 0 : i32
    %c0_i32_0 = arith.constant 0 : i32
    %c0_i32_1 = arith.constant 0 : i32
    return %arg0, %c0_i32, %c0_i32_0 : i32, i32, i32
  }
}

</mosaic_0001>

<bundles_post_ra>
// kernel: tpu_custom_call.1
= control target key start
LH: loop header
LB: loop body
LE: loop exit
PB: predicated region body
PF: predicated region fallthrough
CT: control target
= control target key end

     0   :  { %vm34_vm0 = vcmask 261120   ;;  %s951_s0 = inlined_call_operand.vmem [shape: f32[2,8,32], index: 0, kind: input, shape index: {}]   ;;  %s952_s1 = inlined_call_operand.vmem [shape: f32[2,8,32], index: 1, kind: input, shape index: {}]   ;;  %s953_s2 = inlined_call_operand.vmem [shape: f32[2,8,32], index: 2, kind: input, shape index: {}]   ;;  %s954_s3 = inlined_call_operand.vmem [shape: f32[3,32,16], index: 3, kind: input, shape index: {}]   ;;  %s955_s4 = inlined_call_operand.vmem [shape: f32[3,1,16], index: 4, kind: input, shape index: {}]   ;;  %s956_s5 = inlined_call_operand.hbm [shape: f32[2,8,16], index: 5, kind: output, shape index: {}]  }
   0x1   :  { %v657_v0 = vld [vmem:[%s954_s3 + $0x20] sm:$0xff]  ;;  %v658_v1 = vld [vmem:[%s954_s3 + $0x28] sm:$0xff]  ;;  %v659_v5 = vld [vmem:[%s954_s3 + $0x30] sm:$0xff] }
   0x2   :  { %v23_v2 = vld [vmem:[%s954_s3] sm:$0xff]  ;;  %v766_v3 = vpack.c.bf16 %v658_v1, %v657_v0  ;;  %v24_v4 = vld [vmem:[%s954_s3 + $0x8] sm:$0xff]  ;;  %v660_v6 = vld [vmem:[%s954_s3 + $0x38] sm:$0xff] }
   0x3   :  { %v758_v7 = vpack.c.bf16 %v24_v4, %v23_v2  ;;  %v770_v8 = vpack.c.bf16 %v660_v6, %v659_v5  ;;  %v25_v9 = vld [vmem:[%s954_s3 + $0x10] sm:$0xff]  ;;  %v26_v10 = vld [vmem:[%s954_s3 + $0x18] sm:$0xff]  ;;  %v116_v11 = vld [vmem:[%s952_s1] sm:$0xff] }
   0x4   :  { %767 = vmatprep.subr.bf16.mxu1 %v766_v3  ;;  %v762_v12 = vpack.c.bf16 %v26_v10, %v25_v9  ;;  %724 = vmatprep.mubr.msk.f32.mxu1 %vm34_vm0, %v116_v11  ;;  %v21_v13 = vld [vmem:[%s951_s0] sm:$0xff] }
   0x5   :  { %769 = vmatpush3.bf16.msra.mxu1 %v766_v3  ;;  %759 = vmatprep.subr.bf16.mxu0 %v758_v7 }
   0x6   :  { %10 = vsyncpa [#allocation3], 0  ;;  %761 = vmatpush3.bf16.msra.mxu0 %v758_v7  ;;  %771 = vmatprep.subr.bf16.mxu1 %v770_v8  ;;  %v117_v14 = vld [vmem:[%s952_s1 + $0x8] sm:$0xff]  ;;  %v819_v16 = vmov 0.0   ;;  %vm820_vm1 = vmmov 0   ;;  %vm308_vm2 = vcmask 130048  }
   0x7   :  { %763 = vmatprep.subr.bf16.mxu0 %v762_v12  ;;  %713 = vmatprep.mubr.msk.f32.mxu0 %vm34_vm0, %v21_v13  ;;  %v22_v15 = vld [vmem:[%s951_s0 + $0x8] sm:$0xff]  ;;  %v662_v17 = vld [vmem:[%s955_s4 + $0x1] ss:$0 sm:$0xff]  ;;  %v654_v19 = vld [vmem:[%s955_s4] ss:$0 sm:$0xff]  ;;  %vm461_vm3 = vcmask 64512  }
   0x8   :  { %v665_v27 = vld [vmem:[%s954_s3 + $0x40] sm:$0xff]  ;;  %v666_v28 = vld [vmem:[%s954_s3 + $0x48] sm:$0xff]  ;;  %v667_v29 = vld [vmem:[%s954_s3 + $0x50] sm:$0xff] }
   0x9   :  { %773 = vmatpush3.bf16.msra.mxu1 %v770_v8  ;;  %v774_v30 = vpack.c.bf16 %v666_v28, %v665_v27  ;;  %v668_v31 = vld [vmem:[%s954_s3 + $0x58] sm:$0xff]  ;;  %v212_v32 = vld [vmem:[%s953_s2] sm:$0xff]  ;;  %v213_v34 = vld [vmem:[%s953_s2 + $0x8] sm:$0xff] }
   0xa   :  { %765 = vmatpush3.bf16.msra.mxu0 %v762_v12  ;;  %738 = vmatprep.subr.mxu1 %v819_v16  ;;  %v778_v33 = vpack.c.bf16 %v668_v31, %v667_v29  ;;  %v670_v52 = vld [vmem:[%s955_s4 + $0x2] ss:$0 sm:$0xff]  ;;  %s821_s4 = smov [#allocation2]  }
   0xb   :  { %775 = vmatprep.subr.bf16.mxu0 %v774_v30  ;;  %s643_s6 = sshll.u32 %s821_s4, 4  ;;  %s644_s6 = int_to_ptr.vmem [resolvable:$true] %s643_s6 }
   0xc   :  { %725 = vmatmul.mubr.msk.f32.vlgmr.msra.gmra.mrb[0].mxu1 %vm34_vm0, %v117_v14  ;;  %s795_s7 = scalar_lea.vmem %s644_s6, 256  ;;  %p800_p1 = scmp.lt.s32.totalorder %s644_s6, %s644_s6 }
   0xd   :  { %714 = vmatmul.mubr.msk.f32.vlgmr.msra.gmra.mrb[0].mxu0 %vm34_vm0, %v22_v15  ;;  %740 = vmatprep.mubr.msk.f32.mxu1 %vm820_vm1, %v819_v16  ;;  %p796_p0 = scmp.ne.s32.totalorder %s644_s6, %s795_s7  ;;  %p801_p2 = scmp.lt.s32.totalorder %s795_s7, %s795_s7 }
   0xe   :  { %735 = vmatprep.mubr.msk.f32.mxu0 %vm34_vm0, %v212_v32  ;;  %777 = vmatpush3.bf16.msra.mxu0 %v774_v30 }
   0xf   :  { %779 = vmatprep.subr.bf16.mxu0 %v778_v33  ;;  %p802_p3 = por %p801_p2, %p800_p1 }
  0x11   :  { %p803_p4 = pnand %p802_p3, %p796_p0 }
  0x12   :  { %781 = vmatpush3.bf16.msra.mxu0 %v778_v33 }
  0x13   :  { %748 = vmatprep.subr.mxu0 %v819_v16 }
  0x15   :  { %736 = vmatmul.mubr.msk.f32.vlgmr.msra.gmra.mrb[2].mxu0 %vm34_vm0, %v213_v34 }
  0x16   :  { %750 = vmatprep.mubr.msk.f32.mxu0 %vm820_vm1, %v819_v16 }
  0xdf   :  { %v726_v18 = vpop.f32.mrb[0].mxu1 }
  0xe0   :  { %v203_v20 = vpop.f32.mrb[1].mxu1  ;;  %v715_v21 = vpop.f32.mrb[0].mxu0  ;;  %v209_v25 = vadd.f32 %v726_v18, %v662_v17 }
  0xe1   :  { %v204_v22 = vadd.f32 %v662_v17, %v203_v20  ;;  %v107_v23 = vpop.f32.mrb[1].mxu0  ;;  %v113_v26 = vadd.f32 %v715_v21, %v654_v19 }
  0xe2   :  { %v108_v24 = vadd.f32 %v654_v19, %v107_v23 }
  0xe3   :  { %739 = vmatpush3.xpose.msk.msra.mxu1 %vm308_vm2, %v204_v22 }
  0xe4   :  { %743 = vmatprep.subr.mxu1 %v819_v16 }
  0xe6   :  { %741 = vmatmul.mubr.msk.f32.vlgmr.msra.gmra.mrb[2].mxu1 %vm308_vm2, %v108_v24 }
  0xe7   :  { %744 = vmatpush3.xpose.msk.msra.mxu1 %vm308_vm2, %v209_v25  ;;  %745 = vmatprep.mubr.msk.f32.mxu1 %vm820_vm1, %v819_v16 }
  0xe8   :  { %753 = vmatprep.subr.mxu1 %v819_v16  ;;  %v737_v51 = vpop.f32.mrb[2].mxu0 }
  0xe9   :  { %v299_v53 = vpop.f32.mrb[3].mxu0  ;;  %v305_v55 = vadd.f32 %v737_v51, %v670_v52 }
  0xea   :  { %746 = vmatmul.mubr.msk.f32.vlgmr.msra.gmra.mrb[4].mxu1 %vm308_vm2, %v113_v26  ;;  %v300_v54 = vadd.f32 %v670_v52, %v299_v53 }
  0xeb   :  { %755 = vmatprep.mubr.msk.f32.mxu1 %vm820_vm1, %v819_v16  ;;  %754 = vmatpush3.msra.mxu1 %v305_v55 }
  0xec   :  { %749 = vmatpush3.msra.mxu0 %v300_v54 }
 0x1b9   :  { %v381_v35 = vpop.f32.mrb[2].mxu1 }
 0x1ba   :  { %v742_v36 = vpop.f32.mrb[3].mxu1  ;;  %v462_v37 = vsel %vm461_vm3, %v381_v35, -inf }
 0x1bb   :  { %463 = vmax.xlane.f32.xlu0 %v462_v37 }
 0x1bd   :  { %v457_v38 = vpop.f32.mrb[4].mxu1 }
 0x1be   :  { %v747_v39 = vpop.f32.mrb[5].mxu1  ;;  %v465_v40 = vsel %vm461_vm3, %v457_v38, -inf }
 0x1bf   :  { %466 = vmax.xlane.f32.xlu0 %v465_v40 }
 0x248   :  { %v464_v41 = vpop.xlane.xlu0 %463 }
 0x249   :  { %v468_v42 = vsub.f32 %v381_v35, %v464_v41 }
 0x24b   :  { %v470_v43 = vmul.f32 1.442695, %v468_v42 }
 0x24c   :  { %v467_v44 = vpop.xlane.xlu0 %466 }
 0x24d   :  { %787 = vpow2.f32 %v470_v43  ;;  %v469_v45 = vsub.f32 %v457_v38, %v467_v44 }
 0x24f   :  { %v472_v46 = vmul.f32 1.442695, %v469_v45 }
 0x251   :  { %789 = vpow2.f32 %v472_v46 }
 0x257   :  { %v788_v47 = vpop.eup %787 }
 0x258   :  { %v474_v48 = vsel %vm461_vm3, %v788_v47, 0.0 }
 0x259   :  { %475 = vadd.xlane.f32.xlu1 %v474_v48 }
 0x25b   :  { %v790_v49 = vpop.eup %789 }
 0x25c   :  { %v477_v50 = vsel %vm461_vm3, %v790_v49, 0.0 }
 0x25d   :  { %478 = vadd.xlane.f32.xlu1 %v477_v50 }
 0x2e6   :  { %v476_v56 = vpop.xlane.xlu1 %475 }
 0x2e7   :  { %791 = vrcp.f32 %v476_v56 }
 0x2ea   :  { %v479_v57 = vpop.xlane.xlu1 %478 }
 0x2eb   :  { %793 = vrcp.f32 %v479_v57 }
 0x2f1   :  { %v792_v58 = vpop.eup %791 }
 0x2f2   :  { %v482_v59 = vmul.f32 %v792_v58, %v476_v56 }
 0x2f4   :  { %v484_v60 = vsub.f32 2.0, %v482_v59 }
 0x2f5   :  { %v794_v61 = vpop.eup %793 }
 0x2f6   :  { %v486_v62 = vmul.f32 %v792_v58, %v484_v60  ;;  %v483_v63 = vmul.f32 %v794_v61, %v479_v57 }
 0x2f8   :  { %v488_v0 = vmul.f32 %v788_v47, %v486_v62  ;;  %v485_v1 = vsub.f32 2.0, %v483_v63 }
 0x2fa   :  { %v487_v2 = vmul.f32 %v794_v61, %v485_v1  ;;  %751 = vmatmul.mubr.msk.f32.vlgmr.msra.gmra.mrb[4].mxu0 %vm461_vm3, %v488_v0 }
 0x2fc   :  { %v489_v3 = vmul.f32 %v790_v49, %v487_v2 }
 0x2fe   :  { %756 = vmatmul.mubr.msk.f32.vlgmr.msra.gmra.mrb[6].mxu1 %vm461_vm3, %v489_v3 }
 0x3cd   :  { %v559_v4 = vpop.f32.mrb[4].mxu0 }
 0x3ce   :  { %636 = vst.msk [vmem:[#allocation2] sm:$0xff] %vm308_vm2, %v559_v4  ;;  %v752_v5 = vpop.f32.mrb[5].mxu0 }
 0x3d1   :  { %v632_v6 = vpop.f32.mrb[6].mxu1 }
 0x3d2   :  { %637 = vst.msk [vmem:[#allocation2 + $0x8] sm:$0xff] %vm308_vm2, %v632_v6  ;;  %v757_v7 = vpop.f32.mrb[7].mxu1 }
 0x3d3   :  { %806 = shalt.err (!%p803_p4)
}
 0x3d4   :  { %s807_s10 = scalar_lea.hbm %s956_s5, 256 }
 0x3d5   :  { %p808_p5 = scmp.ne.s32.totalorder %s956_s5, %s807_s10  ;;  %p811_p6 = scmp.lt.u32.totalorder %s807_s10, %s956_s5 }
 0x3d7   :  { %p813_p7 = pnand %p811_p6, %p808_p5 }
 0x3d9   :  { %816 = shalt.err (!%p813_p7)
}
 0x3da   :  { %s822_s15 = smov 128   ;;  %s823_s16 = smov 8  }
 0x3db   :  { %649 = dma.vmem_to_hbm [thread:$0]  %s644_s6, 256, %s956_s5, [#allocation3], %s822_s15, %s822_s15, %s823_s16  }
 0x3dc   :  { %817 = dma.done.wait [#allocation3], 256  }
 0x3dd   :  { %818 = vsyncadd [#allocation3], 4294967040 }
 0x3de   :  { %653 = vsyncpa [#allocation3], 1 }

</bundles_post_ra>
